<compile_context>
chip_gen: v7x
topology: tpu7x:2x2x1
jax: 0.10.0
libtpu: 0.0.40
codegen_flags: <defaults>
</compile_context>

<pallas_src>
import functools

import numpy as np
import jax
import jax.numpy as jnp
from jax.experimental import pallas as pl
from jax.experimental.pallas import tpu as pltpu

NUM_HIDDENS = 64
NUM_RESIDUAL_HIDDENS = 32
NUM_RESIDUAL_LAYERS = 2
OUT_CHANNELS = 64                      # last ConvTranspose1d out_channels


# --------------------------------------------------------------------------
# Roll-direction probe (runs once, outside jit)
# --------------------------------------------------------------------------
_ROLL_NP_CACHE = None


def _roll_matches_numpy():
    """True iff pltpu.roll(x, 1, axis=0)[i] == x[i-1] (np.roll convention)."""
    global _ROLL_NP_CACHE
    if _ROLL_NP_CACHE is None:
        def k(x_ref, o_ref):
            o_ref[...] = pltpu.roll(x_ref[...], 1, axis=0)

        x = jax.lax.broadcasted_iota(jnp.float32, (8, 128), 0)
        y = pl.pallas_call(
            k, out_shape=jax.ShapeDtypeStruct((8, 128), jnp.float32))(x)
        _ROLL_NP_CACHE = bool(float(y[1, 0]) == 0.0)
    return _ROLL_NP_CACHE


# --------------------------------------------------------------------------
# Fused kernel (one batch-block of B elements per grid step)
# --------------------------------------------------------------------------
def _decoder_kernel(x_ref, kp_ref, kn_ref,
                    w1_ref, b1_ref, ra1_ref, rb1_ref, ra2_ref, rb2_ref,
                    wt1_ref, bt1_ref, wt2_ref, bt2_ref,
                    out_ref, *, prev_shift, next_shift):
    """Whole Decoder forward for B stacked batch elements (rows = B*L).

    x_ref  : (M, Cin)  f32   M = B*L stacked rows (element b occupies rows
                             b*L .. b*L+L-1)
    kp_ref : (M, 1)    f32   0 at the first row of each element, else 1
    kn_ref : (M, 1)    f32   0 at the last  row of each element, else 1
    w1_ref : (3, Cin, 64) bf16   conv_1 taps,   b1_ref: (1, 64)   f32
    raX_ref: (3, 64, 32)  bf16   residual 3x3 taps (no bias)
    rbX_ref: (32, 64)     bf16   residual 1x1 conv (no bias)
    wt1_ref: (3, 64, 64)  bf16   ct1 even/odd-fused taps, bt1_ref: (1, 64)
    wt2_ref: (3, 64, 256) bf16   ct2 4-phase-fused taps,  bt2_ref: (1, 256)
    out_ref: (M, 256) f32   row m = [y[4m] | y[4m+1] | y[4m+2] | y[4m+3]]
    """
    f32 = jnp.float32
    bf16 = jnp.bfloat16
    kp = kp_ref[...]                       # (M, 1)
    kn = kn_ref[...]                       # (M, 1)

    def conv3(h, w_ref):
        # y[m] = h[m-1]@w[0] + h[m]@w[1] + h[m+1]@w[2]   (zero-padded per
        # element: rolled rows that cross an element boundary are masked off).
        hp = (pltpu.roll(h, prev_shift, axis=0) * kp).astype(bf16)
        hn = (pltpu.roll(h, next_shift, axis=0) * kn).astype(bf16)
        return (jnp.dot(hp, w_ref[0], preferred_element_type=f32)
                + jnp.dot(h.astype(bf16), w_ref[1], preferred_element_type=f32)
                + jnp.dot(hn, w_ref[2], preferred_element_type=f32))

    # conv_1 (k=3, p=1, bias)
    h = conv3(x_ref[...], w1_ref) + b1_ref[...]                    # (M, 64)

    # ResidualStack: 2 x (ReLU -> 3x3 conv -> ReLU -> 1x1 conv) with skip
    for wa_ref, wb_ref in ((ra1_ref, rb1_ref), (ra2_ref, rb2_ref)):
        t = jnp.maximum(conv3(jnp.maximum(h, 0.0), wa_ref), 0.0)   # (M, 32)
        h = h + jnp.dot(t.astype(bf16), wb_ref[...],
                        preferred_element_type=f32)

    # Final ReLU of the stack, ConvTranspose1d #1 (k=4,s=2,p=1) with even/odd
    # phases fused along lanes, then ReLU.
    mid = jnp.maximum(conv3(jnp.maximum(h, 0.0), wt1_ref) + bt1_ref[...], 0.0)

    # ConvTranspose1d #2 (k=4,s=2,p=1) with all 4 output phases fused along
    # lanes (weights pre-arranged so mid = [even|odd] feeds a plain 3-tap conv).
    out_ref[...] = conv3(mid, wt2_ref) + bt2_ref[...]               # (M, 256)


# --------------------------------------------------------------------------
# Wrapper
# --------------------------------------------------------------------------
def _pick_batch_block(N, L):
    # Fold batch into the matmul M dim (target ~256 sublane rows for the
    # v6e/v7x MXU) while keeping >= 2 grid steps when N allows it, so the
    # 'parallel' grid axis can be split across v7x's two TensorCores.
    best = 1
    for d in (2, 4, 8, 16, 32):
        if N % d == 0 and d * L <= 256 and N // d >= 2:
            best = d
    if (best * L) % 8 != 0:
        # Fall back to one block covering the whole array (block shape equal
        # to the full array dims is always legal).
        best = N
    return best


def _full_spec(a):
    nd = a.ndim
    return pl.BlockSpec(tuple(a.shape), lambda i, _nd=nd: (0,) * _nd)


def decoder_pallas(x_nlc, p, roll_np):
    """x_nlc: (N, L, Cin) f32 -> (N, 4L, OUT_CHANNELS) channels-last output."""
    N, L, Cin = x_nlc.shape
    H, R = NUM_HIDDENS, NUM_RESIDUAL_HIDDENS
    outw = 4 * OUT_CHANNELS

    B = _pick_batch_block(N, L)
    M = B * L
    prev_shift = 1 if roll_np else M - 1       # rolled row r holds h[r-1]
    next_shift = (M - 1) if roll_np else 1     # rolled row r holds h[r+1]

    # Per-row keep masks: 0 at per-element boundary rows (zero padding), 1 else.
    jpos = np.arange(M) % L
    kp = jnp.asarray((jpos != 0).astype(np.float32).reshape(M, 1))
    kn = jnp.asarray((jpos != L - 1).astype(np.float32).reshape(M, 1))

    x2 = x_nlc.reshape(N * L, Cin)
    weights = (p["w1"], p["b1"], p["ra1"], p["rb1"], p["ra2"], p["rb2"],
               p["wt1c"], p["bt1c"], p["wt2c"], p["bt2c"])

    in_specs = ([pl.BlockSpec((M, Cin), lambda i: (i, 0)),
                 _full_spec(kp), _full_spec(kn)]
                + [_full_spec(w) for w in weights])

    flops_per_row = 2 * (3 * Cin * H
                         + NUM_RESIDUAL_LAYERS * (3 * H * R + R * H)
                         + 3 * H * H
                         + 3 * H * outw)
    bytes_accessed = (int(x2.size) * x2.dtype.itemsize
                      + int(kp.size + kn.size) * 4
                      + sum(int(np.prod(w.shape)) * w.dtype.itemsize
                            for w in weights)
                      + N * L * outw * 4)
    cost = pl.CostEstimate(flops=int(N * L * flops_per_row),
                           transcendentals=0,
                           bytes_accessed=int(bytes_accessed))

    kernel = functools.partial(_decoder_kernel,
                               prev_shift=prev_shift, next_shift=next_shift)

    out2 = pl.pallas_call(
        kernel,
        out_shape=jax.ShapeDtypeStruct((N * L, outw), jnp.float32),
        grid_spec=pltpu.PrefetchScalarGridSpec(
            num_scalar_prefetch=0,
            grid=(N // B,),
            in_specs=in_specs,
            out_specs=pl.BlockSpec((M, outw), lambda i: (i, 0))),
        compiler_params=pltpu.CompilerParams(
            dimension_semantics=("parallel",)),
        cost_estimate=cost,
    )(x2, kp, kn, *weights)

    # Row m (per element) is [y[4m] | y[4m+1] | y[4m+2] | y[4m+3]], each
    # OUT_CHANNELS wide -> free row-major reshape to channels-last (N, 4L, C).
    return out2.reshape(N, 4 * L, OUT_CHANNELS)


@functools.partial(jax.jit, static_argnums=(2,))
def _decoder_fwd_nlc_jit(x_ncl, p, roll_np):
    x = jnp.transpose(x_ncl, (0, 2, 1))            # NCL -> NLC (tiny input)
    return decoder_pallas(x, p, roll_np)


def decoder_forward_channels_last(x_ncl, p):
    """(N, Cin, L) -> (N, 4L, 64) channels-last; no output-side transpose."""
    return _decoder_fwd_nlc_jit(x_ncl, p, _roll_matches_numpy())


def decoder_forward(x_ncl, p):
    """PyTorch-layout output (N, 64, 4L). Thin adapter over the NLC path; if
    the consumer accepts channels-last, use decoder_forward_channels_last."""
    return jnp.transpose(decoder_forward_channels_last(x_ncl, p), (0, 2, 1))


# --------------------------------------------------------------------------
# Deterministic parameter init (PyTorch layouts) + kernel-layout conversion
# --------------------------------------------------------------------------
def _to_kernel_params(raw):
    H = NUM_HIDDENS
    C1 = H // 2                                          # 32
    Co = OUT_CHANNELS                                    # 64
    bf16 = jnp.bfloat16

    # ct1: y[2m] = x[m]@T1 + x[m-1]@T3 + b ; y[2m+1] = x[m]@T2 + x[m+1]@T0 + b
    T = [raw["wt1"][:, :, k] for k in range(4)]          # each (64, 32)
    zT = jnp.zeros_like(T[0])
    wt1c = jnp.stack([jnp.concatenate([T[3], zT], axis=1),      # tap m-1
                      jnp.concatenate([T[1], T[2]], axis=1),    # tap m
                      jnp.concatenate([zT, T[0]], axis=1)],     # tap m+1
                     axis=0)                                     # (3, 64, 64)
    bt1c = jnp.tile(raw["bt1"].reshape(1, C1), (1, 2))           # (1, 64)

    # ct2 on mid = [even|odd]: 4 output phases per mid row.
    V = [raw["wt2"][:, :, k] for k in range(4)]          # each (32, 64)
    zV = jnp.zeros_like(V[0])
    u_prev = jnp.concatenate(
        [jnp.zeros((C1, 4 * Co), jnp.float32),
         jnp.concatenate([V[3], zV, zV, zV], axis=1)], axis=0)   # (64, 256)
    u_cur = jnp.concatenate(
        [jnp.concatenate([V[1], V[2], V[3], zV], axis=1),
         jnp.concatenate([zV, V[0], V[1], V[2]], axis=1)], axis=0)
    u_next = jnp.concatenate(
        [jnp.concatenate([zV, zV, zV, V[0]], axis=1),
         jnp.zeros((C1, 4 * Co), jnp.float32)], axis=0)
    wt2c = jnp.stack([u_prev, u_cur, u_next], axis=0)            # (3, 64, 256)
    bt2c = jnp.tile(raw["bt2"].reshape(1, Co), (1, 4))           # (1, 256)

    # Matmul weights in bf16 (f32 accumulation in-kernel); biases stay f32.
    return dict(
        w1=jnp.transpose(raw["w1"], (2, 1, 0)).astype(bf16),   # (3, Cin, 64)
        b1=raw["b1"].reshape(1, H),
        ra1=jnp.transpose(raw["ra1"], (2, 1, 0)).astype(bf16), # (3, 64, 32)
        rb1=raw["rb1"][:, :, 0].T.astype(bf16),                # (32, 64)
        ra2=jnp.transpose(raw["ra2"], (2, 1, 0)).astype(bf16),
        rb2=raw["rb2"][:, :, 0].T.astype(bf16),
        wt1c=wt1c.astype(bf16), bt1c=bt1c,
        wt2c=wt2c.astype(bf16), bt2c=bt2c)


def init_params(key, in_channels):
    H, R = NUM_HIDDENS, NUM_RESIDUAL_HIDDENS
    ks = jax.random.split(key, 10)

    def u(k, shape, fan_in):
        bound = 1.0 / np.sqrt(fan_in)
        return jax.random.uniform(k, shape, jnp.float32, -bound, bound)

    raw = dict(
        w1=u(ks[0], (H, in_channels, 3), in_channels * 3),
        b1=u(ks[1], (H,), in_channels * 3),
        ra1=u(ks[2], (R, H, 3), H * 3),
        rb1=u(ks[3], (H, R, 1), R),
        ra2=u(ks[4], (R, H, 3), H * 3),
        rb2=u(ks[5], (H, R, 1), R),
        wt1=u(ks[6], (H, H // 2, 4), H * 4),
        bt1=u(ks[7], (H // 2,), H * 4),
        wt2=u(ks[8], (H // 2, OUT_CHANNELS, 4), (H // 2) * 4),
        bt2=u(ks[9], (OUT_CHANNELS,), (H // 2) * 4),
    )
    return raw, _to_kernel_params(raw)


# --------------------------------------------------------------------------
# Independent numpy reference (PyTorch semantics, NCL layout, f32)
# --------------------------------------------------------------------------
def np_conv1d(x, w, b, pad):
    N, Cin, L = x.shape
    Cout, _, K = w.shape
    xp = np.pad(x, ((0, 0), (0, 0), (pad, pad)))
    Lout = L + 2 * pad - K + 1
    y = np.zeros((N, Cout, Lout), np.float32)
    for j in range(Lout):
        y[:, :, j] = np.einsum('nck,ock->no', xp[:, :, j:j + K], w)
    return y + (b[None, :, None] if b is not None else 0.0)


def np_convtrans1d(x, w, b, stride, pad):
    N, Cin, L = x.shape
    _, Cout, K = w.shape
    Lout = (L - 1) * stride - 2 * pad + K
    y = np.zeros((N, Cout, Lout), np.float32)
    for j in range(L):
        for k in range(K):
            o = stride * j + k - pad
            if 0 <= o < Lout:
                y[:, :, o] += np.einsum('nc,cd->nd', x[:, :, j], w[:, :, k])
    return y + b[None, :, None]


def np_decoder_ref(x, p):
    h = np_conv1d(x, p['w1'], p['b1'], pad=1)
    for ra, rb in ((p['ra1'], p['rb1']), (p['ra2'], p['rb2'])):
        t = np.maximum(h, 0.0)
        t = np_conv1d(t, ra, None, pad=1)
        t = np.maximum(t, 0.0)
        t = np_conv1d(t, rb, None, pad=0)
        h = h + t
    h = np.maximum(h, 0.0)
    h = np.maximum(np_convtrans1d(h, p['wt1'], p['bt1'], 2, 1), 0.0)
    return np_convtrans1d(h, p['wt2'], p['bt2'], 2, 1)


# --------------------------------------------------------------------------
if __name__ == "__main__":
    # N=4 exercises both multi-element batch folding (B=2, M=32 rows) and a
    # multi-step 'parallel' grid (grid=(2,)).
    N, C_IN, L = 4, 8, 16
    key = jax.random.PRNGKey(0)
    kx, kparam = jax.random.split(key)
    x = jax.random.normal(kx, (N, C_IN, L), jnp.float32)     # PyTorch NCL input
    raw_params, kernel_params = init_params(kparam, C_IN)

    y = decoder_forward(x, kernel_params)
    y = jax.block_until_ready(y)
    assert y.shape == (N, OUT_CHANNELS, 4 * L), y.shape

    y_ref = np_decoder_ref(np.asarray(x),
                           {k: np.asarray(v) for k, v in raw_params.items()})
    err = np.max(np.abs(np.asarray(y) - y_ref))
    # bf16 matmul operands (f32 accumulation) vs f32 reference: allow ~1e-2
    # level accumulated error.
    if not np.allclose(np.asarray(y), y_ref, rtol=5e-2, atol=5e-2):
        raise SystemExit(f"mismatch vs reference, max abs err = {err}")
    print("KERNEL_OK")
</pallas_src>

<mosaic_0001>
module attributes {stable_mosaic.version = 11 : i64} {
  func.func @k(%arg0: memref<8x128xf32, #tpu.memory_space<vmem>>, %arg1: memref<8x128xf32, #tpu.memory_space<vmem>>) attributes {dimension_semantics = [], scalar_prefetch = 0 : i64, scratch_operands = 0 : i64, tpu.core_type = #tpu.core_type<tc>} {
    %c0 = arith.constant 0 : index
    %c0_0 = arith.constant 0 : index
    %0 = vector.load %arg0[%c0, %c0_0] : memref<8x128xf32, #tpu.memory_space<vmem>>, vector<8x128xf32>
    %c1_i32 = arith.constant 1 : i32
    %1 = tpu.dynamic_rotate %0 by %c1_i32 dim 0 : vector<8x128xf32>, i32 -> vector<8x128xf32>
    %c0_1 = arith.constant 0 : index
    %c0_2 = arith.constant 0 : index
    %2 = vector.load %arg1[%c0_1, %c0_2] : memref<8x128xf32, #tpu.memory_space<vmem>>, vector<8x128xf32>
    tpu.vector_store %arg1[%c0_1, %c0_2], %1 {strides = array<i32>} : memref<8x128xf32, #tpu.memory_space<vmem>>, vector<8x128xf32>,
    return
  }
}

</mosaic_0001>

<bundles_post_ra>
// kernel: tpu_custom_call.1
= control target key start
LH: loop header
LB: loop body
LE: loop exit
PB: predicated region body
PF: predicated region fallthrough
CT: control target
= control target key end

     0   :  { %6 = vsyncpa [#allocation3], 0  ;;  %s125_s0 = inlined_call_operand.hbm [shape: f32[8,128], index: 0, kind: input, shape index: {}]   ;;  %s126_s1 = inlined_call_operand.hbm [shape: f32[8,128], index: 1, kind: output, shape index: {}]  }
   0x1   :  { %7 = vsyncpa [#allocation4], 0  ;;  %s89_s6 = smov [#allocation2]   ;;  %s41_s10 = scalar_lea.hbm %s125_s0, 128 }
   0x2   :  { %s14_s7 = sshll.u32 %s89_s6, 4  ;;  %p42_p0 = scmp.ne.s32.totalorder %s125_s0, %s41_s10  ;;  %s15_s7 = int_to_ptr.vmem [resolvable:$true] %s14_s7 }
   0x3   :  { %p45_p1 = scmp.lt.u32.totalorder %s41_s10, %s125_s0 }
   0x5   :  { %p47_p2 = pnand %p45_p1, %p42_p0 }
   0x7   :  { %50 = shalt.err (!%p47_p2)
}
   0x8   :  { %s51_s15 = scalar_lea.vmem %s15_s7, 128  ;;  %p56_p4 = scmp.lt.s32.totalorder %s15_s7, %s15_s7 }
   0x9   :  { %p52_p3 = scmp.ne.s32.totalorder %s15_s7, %s51_s15  ;;  %p57_p5 = scmp.lt.s32.totalorder %s51_s15, %s51_s15 }
   0xb   :  { %p58_p6 = por %p57_p5, %p56_p4 }
   0xd   :  { %p59_p7 = pnand %p58_p6, %p52_p3 }
   0xf   :  { %62 = shalt.err (!%p59_p7)
}
  0x10   :  { %17 = dma.hbm_to_vmem [thread:$0]  %s125_s0, 128, %s15_s7, [#allocation3]  }
  0x11   :  { %85 = dma.done.wait [#allocation3], 128  }
  0x12   :  { %86 = vsyncadd [#allocation3], 4294967168  ;;  %s90_s18 = smov [#allocation5]   ;;  %v21_v0 = vld [vmem:[#allocation2] sm:$0xff] }
  0x13   :  { %s30_s19 = sshll.u32 %s90_s18, 4  ;;  %v22_v1 = vrot.slane %v21_v0, 7  ;;  %s31_s19 = int_to_ptr.vmem [resolvable:$true] %s30_s19 }
  0x14   :  { %s63_s20 = scalar_lea.vmem %s31_s19, 128  ;;  %p68_p9 = scmp.lt.s32.totalorder %s31_s19, %s31_s19 }
  0x15   :  { %23 = vst [vmem:[#allocation5] sm:$0xff] %v22_v1  ;;  %p64_p8 = scmp.ne.s32.totalorder %s31_s19, %s63_s20  ;;  %p69_p10 = scmp.lt.s32.totalorder %s63_s20, %s63_s20 }
  0x17   :  { %p70_p11 = por %p69_p10, %p68_p9 }
  0x19   :  { %p71_p12 = pnand %p70_p11, %p64_p8 }
  0x1b   :  { %74 = shalt.err (!%p71_p12)
}
  0x1c   :  { %s75_s23 = scalar_lea.hbm %s126_s1, 128 }
  0x1d   :  { %p76_p13 = scmp.ne.s32.totalorder %s126_s1, %s75_s23  ;;  %p79_p0 = scmp.lt.u32.totalorder %s75_s23, %s126_s1 }
  0x1f   :  { %p81_p1 = pnand %p79_p0, %p76_p13 }
  0x21   :  { %84 = shalt.err (!%p81_p1)
}
  0x22   :  { %33 = dma.vmem_to_hbm [thread:$0]  %s31_s19, 128, %s126_s1, [#allocation4]  }
  0x23   :  { %87 = dma.done.wait [#allocation4], 128  }
  0x24   :  { %88 = vsyncadd [#allocation4], 4294967168 }
  0x25   :  { %37 = vsyncpa [#allocation3], 1 }
  0x26   :  { %38 = vsyncpa [#allocation4], 1 }

</bundles_post_ra>
